<compile_context>
chip_gen: v7x
topology: tpu7x:2x2x1
jax: 0.10.0
libtpu: 0.0.40
codegen_flags: <defaults>
</compile_context>

<pallas_src>
import math
import functools

import jax
import jax.numpy as jnp
from jax.experimental import pallas as pl
from jax.experimental.pallas import tpu as pltpu


def _round_up(x, m):
    return ((x + m - 1) // m) * m


def _vmem_limit_bytes():
    # Generation-aware scoped-VMEM limit: 3/4 of physical capacity
    # (~96 MiB on v5e/v6e's 128 MiB, ~48 MiB on v7x's 64 MiB).
    try:
        cap = pltpu.get_tpu_info().vmem_capacity_bytes
    except Exception:
        cap = 64 * 1024 * 1024
    return int(cap * 3 // 4)


# ----------------------------------------------------------------------------
# Kernel: one TM-row block of the batch, all three layers fused.
# ----------------------------------------------------------------------------
def _mlp_kernel(x_ref, w1_ref, b1_ref, w2_ref, b2_ref, w3_ref, b3_ref, o_ref):
    # Layer 1: Linear (bf16 MXU operands, f32 accumulation) -> bias -> ReLU.
    h1 = jnp.dot(x_ref[...], w1_ref[...], preferred_element_type=jnp.float32)
    h1 = jnp.maximum(h1 + b1_ref[...], 0.0)
    # Layer 2: Linear -> bias -> ReLU   (BN1 folded into w2/b2, Dropout = id).
    h2 = jnp.dot(h1.astype(jnp.bfloat16), w2_ref[...],
                 preferred_element_type=jnp.float32)
    h2 = jnp.maximum(h2 + b2_ref[...], 0.0)
    # Layer 3: Linear (logits, lane-padded; BN2 folded into w3/b3).
    out = jnp.dot(h2.astype(jnp.bfloat16), w3_ref[...],
                  preferred_element_type=jnp.float32)
    o_ref[...] = (out + b3_ref[...]).astype(o_ref.dtype)


# ----------------------------------------------------------------------------
# Wrapper
# ----------------------------------------------------------------------------
@functools.partial(jax.jit, static_argnames=("n_classes", "tm"))
def task_a_classifier_forward(x, kernel_params, n_classes, tm=512):
    """x: (N, emb_dim) f32 (or bf16).  kernel_params: folded + padded weights.
    Returns logits (N, n_classes) f32."""
    w1, b1, w2, b2, w3, b3 = kernel_params
    n, e_in = x.shape
    e_k = w1.shape[0]
    hp, h2p, cp = w1.shape[1], w2.shape[1], w3.shape[1]

    # Stream x in bf16 (lane-pad its feature dim only if the params were padded).
    x = x.astype(jnp.bfloat16)
    if e_k != e_in:
        x = jnp.pad(x, ((0, 0), (0, e_k - e_in)))

    # Batch tile: multiple of 8 sublanes; cap at ceil(n/2) so the grid has at
    # least two steps (lets the "parallel" axis shard across v7x's two TCs).
    tm_eff = min(tm, _round_up(max(1, -(-n // 2)), 8))
    grid = (pl.cdiv(n, tm_eff),)

    def resident(shape):
        # Weights / biases: same block every grid step -> stay in VMEM.
        # Buffered(1): no useless second pipeline buffer for constant blocks.
        try:
            return pl.BlockSpec(shape, lambda i: (0, 0),
                                pipeline_mode=pl.Buffered(1))
        except TypeError:  # older jax without pipeline_mode kwarg
            return pl.BlockSpec(shape, lambda i: (0, 0))

    flops = 2 * n * (e_k * hp + hp * h2p + h2p * cp)
    bytes_accessed = (2 * (n * e_k + n * cp)                     # bf16 x / out
                      + 2 * (e_k * hp + hp * h2p + h2p * cp)     # bf16 weights
                      + 4 * (hp + h2p + cp))                     # f32 biases

    out_padded = pl.pallas_call(
        _mlp_kernel,
        out_shape=jax.ShapeDtypeStruct((n, cp), jnp.bfloat16),
        grid=grid,
        in_specs=[
            pl.BlockSpec((tm_eff, e_k), lambda i: (i, 0)),   # streamed x block
            resident((e_k, hp)),  resident((1, hp)),         # w1, b1
            resident((hp, h2p)),  resident((1, h2p)),        # w2', b2' (BN1 folded)
            resident((h2p, cp)),  resident((1, cp)),         # w3', b3' (BN2 folded)
        ],
        out_specs=pl.BlockSpec((tm_eff, cp), lambda i: (i, 0)),
        compiler_params=pltpu.CompilerParams(
            dimension_semantics=("parallel",),        # megacore on v7x
            vmem_limit_bytes=_vmem_limit_bytes(),     # generation-aware
        ),
        cost_estimate=pl.CostEstimate(
            flops=flops, transcendentals=0, bytes_accessed=bytes_accessed),
    )(x, w1, b1, w2, b2, w3, b3)

    # Narrow slice + cast fuse into one small XLA op on the valid columns.
    return out_padded[:, :n_classes].astype(jnp.float32)


# ----------------------------------------------------------------------------
# Parameter construction (matches the PyTorch module's _init_weights)
# ----------------------------------------------------------------------------
def init_params(key, emb_dim, h_dim, n_classes):
    """Raw (unfolded) params: Linear weights stored (in, out) so the kernel can
    do x @ W; kaiming_normal_(fan_in, relu), zero biases, BN defaults."""
    h2 = h_dim // 2
    k1, k2, k3 = jax.random.split(key, 3)

    def kaiming(k, fan_in, fan_out):
        std = math.sqrt(2.0 / fan_in)
        return jax.random.normal(k, (fan_in, fan_out), dtype=jnp.float32) * std

    w1 = kaiming(k1, emb_dim, h_dim)
    b1 = jnp.zeros((h_dim,), jnp.float32)
    w2 = kaiming(k2, h_dim, h2)
    b2 = jnp.zeros((h2,), jnp.float32)
    w3 = kaiming(k3, h2, n_classes)
    b3 = jnp.zeros((n_classes,), jnp.float32)

    # BatchNorm1d defaults: gamma=1, beta=0, running_mean=0, running_var=1
    g1, be1 = jnp.ones((h_dim,)), jnp.zeros((h_dim,))
    m1, v1 = jnp.zeros((h_dim,)), jnp.ones((h_dim,))
    g2, be2 = jnp.ones((h2,)), jnp.zeros((h2,))
    m2, v2 = jnp.zeros((h2,)), jnp.ones((h2,))

    return (w1, b1, w2, b2, w3, b3, g1, be1, m1, v1, g2, be2, m2, v2)


def fold_and_pad_params(raw, eps=1e-5):
    """Fold eval-mode BN into the following Linear, pad MXU output dims to
    multiples of 128 lanes, and cast weights to bf16 (biases stay f32).
    Done once per parameter set, not per call."""
    (w1, b1, w2, b2, w3, b3, g1, be1, m1, v1, g2, be2, m2, v2) = raw

    s1 = g1 / jnp.sqrt(v1 + eps)
    t1 = be1 - m1 * s1
    s2 = g2 / jnp.sqrt(v2 + eps)
    t2 = be2 - m2 * s2

    # bn(relu(xW1+b1)) @ W2 + b2  ==  relu(xW1+b1) @ (s1[:,None]*W2) + (b2 + t1@W2)
    w2f = s1[:, None] * w2
    b2f = b2 + t1 @ w2
    w3f = s2[:, None] * w3
    b3f = b3 + t2 @ w3

    e = w1.shape[0]
    # Lane-pad the contraction dim of layer 1 only when large and misaligned;
    # tiny feature dims are cheaper left as-is (full-dim blocks are legal).
    ep = _round_up(e, 128) if (e > 128 and e % 128 != 0) else e
    hp = _round_up(w1.shape[1], 128)
    h2p = _round_up(w2.shape[1], 128)
    cp = _round_up(w3.shape[1], 128)

    def pad_w(w, rows, cols):
        r, c = w.shape
        return jnp.pad(w, ((0, rows - r), (0, cols - c))).astype(jnp.bfloat16)

    def pad_b(b, cols):
        return jnp.pad(b, (0, cols - b.shape[0])).reshape(1, cols).astype(jnp.float32)

    w1p = pad_w(w1, ep, hp)
    w2p = pad_w(w2f, hp, h2p)
    w3p = pad_w(w3f, h2p, cp)
    b1p = pad_b(b1, hp)
    b2p = pad_b(b2f, h2p)
    b3p = pad_b(b3f, cp)
    return (w1p, b1p, w2p, b2p, w3p, b3p)


def reference_forward(x, raw, eps=1e-5):
    """Pure-JAX eval-mode reference (explicit BN, no folding, no padding, f32)."""
    (w1, b1, w2, b2, w3, b3, g1, be1, m1, v1, g2, be2, m2, v2) = raw
    h = jnp.maximum(x @ w1 + b1, 0.0)
    h = (h - m1) / jnp.sqrt(v1 + eps) * g1 + be1
    h = jnp.maximum(h @ w2 + b2, 0.0)
    h = (h - m2) / jnp.sqrt(v2 + eps) * g2 + be2
    return h @ w3 + b3


if __name__ == "__main__":
    emb_dim, h_dim, n_classes = 32, 32, 8
    batch = 64

    key = jax.random.PRNGKey(0)
    kx, kp = jax.random.split(key)
    x = jax.random.normal(kx, (batch, emb_dim), dtype=jnp.float32)

    raw_params = init_params(kp, emb_dim, h_dim, n_classes)
    kernel_params = fold_and_pad_params(raw_params)

    out = task_a_classifier_forward(x, kernel_params, n_classes)
    out = jax.block_until_ready(out)

    ref = reference_forward(x, raw_params)
    assert out.shape == (batch, n_classes)
    # bf16 operands + bf16 logits writeback -> loosened tolerance vs f32 ref.
    assert jnp.allclose(out, ref, atol=1e-1, rtol=1e-1), "mismatch vs reference"

    print("KERNEL_OK")
</pallas_src>

<mosaic_0001>
module attributes {stable_mosaic.version = 11 : i64} {
  func.func @_mlp_kernel(%arg0: i32, %arg1: memref<32x32xbf16, #tpu.memory_space<vmem>>, %arg2: memref<32x128xbf16, #tpu.memory_space<vmem>>, %arg3: memref<1x128xf32, #tpu.memory_space<vmem>>, %arg4: memref<128x128xbf16, #tpu.memory_space<vmem>>, %arg5: memref<1x128xf32, #tpu.memory_space<vmem>>, %arg6: memref<128x128xbf16, #tpu.memory_space<vmem>>, %arg7: memref<1x128xf32, #tpu.memory_space<vmem>>, %arg8: memref<32x128xbf16, #tpu.memory_space<vmem>>) attributes {dimension_semantics = [#tpu.dimension_semantics<parallel>], iteration_bounds = array<i64: 2>, scalar_prefetch = 0 : i64, scratch_operands = 0 : i64, tpu.core_type = #tpu.core_type<tc>, window_params = [{transform_indices = @transform_0, window_bounds = array<i64: 32, 32>}, {pipeline_mode = #tpu.pipeline_mode<synchronous>, transform_indices = @transform_1, window_bounds = array<i64: 32, 128>}, {pipeline_mode = #tpu.pipeline_mode<synchronous>, transform_indices = @transform_2, window_bounds = array<i64: 1, 128>}, {pipeline_mode = #tpu.pipeline_mode<synchronous>, transform_indices = @transform_3, window_bounds = array<i64: 128, 128>}, {pipeline_mode = #tpu.pipeline_mode<synchronous>, transform_indices = @transform_4, window_bounds = array<i64: 1, 128>}, {pipeline_mode = #tpu.pipeline_mode<synchronous>, transform_indices = @transform_5, window_bounds = array<i64: 128, 128>}, {pipeline_mode = #tpu.pipeline_mode<synchronous>, transform_indices = @transform_6, window_bounds = array<i64: 1, 128>}, {transform_indices = @transform_7, window_bounds = array<i64: 32, 128>}]} {
    %c0 = arith.constant 0 : index
    %c0_0 = arith.constant 0 : index
    %0 = vector.load %arg1[%c0, %c0_0] : memref<32x32xbf16, #tpu.memory_space<vmem>>, vector<32x32xbf16>
    %c0_1 = arith.constant 0 : index
    %c0_2 = arith.constant 0 : index
    %1 = vector.load %arg2[%c0_1, %c0_2] : memref<32x128xbf16, #tpu.memory_space<vmem>>, vector<32x128xbf16>
    %cst = arith.constant dense<0.000000e+00> : vector<32x128xf32>
    %2 = tpu.matmul %0, %1, %cst {dimension_numbers = #tpu.dot_dimension_numbers<[1], [0], [0], [1], [0, 0, 1, 1], [], []>} : vector<32x32xbf16>, vector<32x128xbf16>, vector<32x128xf32> -> vector<32x128xf32>
    %c0_3 = arith.constant 0 : index
    %c0_4 = arith.constant 0 : index
    %3 = vector.load %arg3[%c0_3, %c0_4] : memref<1x128xf32, #tpu.memory_space<vmem>>, vector<1x128xf32>
    %4 = vector.broadcast %3 : vector<1x128xf32> to vector<32x128xf32>
    %5 = arith.addf %2, %4 : vector<32x128xf32>
    %cst_5 = arith.constant 0.000000e+00 : f32
    %6 = vector.broadcast %cst_5 : f32 to vector<32x128xf32>
    %7 = arith.maximumf %5, %6 : vector<32x128xf32>
    %8 = arith.truncf %7 : vector<32x128xf32> to vector<32x128xbf16>
    %c0_6 = arith.constant 0 : index
    %c0_7 = arith.constant 0 : index
    %9 = vector.load %arg4[%c0_6, %c0_7] : memref<128x128xbf16, #tpu.memory_space<vmem>>, vector<128x128xbf16>
    %cst_8 = arith.constant dense<0.000000e+00> : vector<32x128xf32>
    %10 = tpu.matmul %8, %9, %cst_8 {dimension_numbers = #tpu.dot_dimension_numbers<[1], [0], [0], [1], [0, 0, 1, 1], [], []>} : vector<32x128xbf16>, vector<128x128xbf16>, vector<32x128xf32> -> vector<32x128xf32>
    %c0_9 = arith.constant 0 : index
    %c0_10 = arith.constant 0 : index
    %11 = vector.load %arg5[%c0_9, %c0_10] : memref<1x128xf32, #tpu.memory_space<vmem>>, vector<1x128xf32>
    %12 = vector.broadcast %11 : vector<1x128xf32> to vector<32x128xf32>
    %13 = arith.addf %10, %12 : vector<32x128xf32>
    %cst_11 = arith.constant 0.000000e+00 : f32
    %14 = vector.broadcast %cst_11 : f32 to vector<32x128xf32>
    %15 = arith.maximumf %13, %14 : vector<32x128xf32>
    %16 = arith.truncf %15 : vector<32x128xf32> to vector<32x128xbf16>
    %c0_12 = arith.constant 0 : index
    %c0_13 = arith.constant 0 : index
    %17 = vector.load %arg6[%c0_12, %c0_13] : memref<128x128xbf16, #tpu.memory_space<vmem>>, vector<128x128xbf16>
    %cst_14 = arith.constant dense<0.000000e+00> : vector<32x128xf32>
    %18 = tpu.matmul %16, %17, %cst_14 {dimension_numbers = #tpu.dot_dimension_numbers<[1], [0], [0], [1], [0, 0, 1, 1], [], []>} : vector<32x128xbf16>, vector<128x128xbf16>, vector<32x128xf32> -> vector<32x128xf32>
    %c0_15 = arith.constant 0 : index
    %c0_16 = arith.constant 0 : index
    %19 = vector.load %arg7[%c0_15, %c0_16] : memref<1x128xf32, #tpu.memory_space<vmem>>, vector<1x128xf32>
    %20 = vector.broadcast %19 : vector<1x128xf32> to vector<32x128xf32>
    %21 = arith.addf %18, %20 : vector<32x128xf32>
    %22 = arith.truncf %21 : vector<32x128xf32> to vector<32x128xbf16>
    %c0_17 = arith.constant 0 : index
    %c0_18 = arith.constant 0 : index
    %23 = vector.load %arg8[%c0_17, %c0_18] : memref<32x128xbf16, #tpu.memory_space<vmem>>, vector<32x128xbf16>
    tpu.vector_store %arg8[%c0_17, %c0_18], %22 {strides = array<i32>} : memref<32x128xbf16, #tpu.memory_space<vmem>>, vector<32x128xbf16>,
    return
  }
  func.func @transform_0(%arg0: i32) -> (i32, i32) {
    %c0_i32 = arith.constant 0 : i32
    %c0_i32_0 = arith.constant 0 : i32
    return %arg0, %c0_i32 : i32, i32
  }
  func.func @transform_1(%arg0: i32) -> (i32, i32) {
    %c0_i32 = arith.constant 0 : i32
    %c0_i32_0 = arith.constant 0 : i32
    %c0_i32_1 = arith.constant 0 : i32
    return %c0_i32, %c0_i32_0 : i32, i32
  }
  func.func @transform_2(%arg0: i32) -> (i32, i32) {
    %c0_i32 = arith.constant 0 : i32
    %c0_i32_0 = arith.constant 0 : i32
    %c0_i32_1 = arith.constant 0 : i32
    return %c0_i32, %c0_i32_0 : i32, i32
  }
  func.func @transform_3(%arg0: i32) -> (i32, i32) {
    %c0_i32 = arith.constant 0 : i32
    %c0_i32_0 = arith.constant 0 : i32
    %c0_i32_1 = arith.constant 0 : i32
    return %c0_i32, %c0_i32_0 : i32, i32
  }
  func.func @transform_4(%arg0: i32) -> (i32, i32) {
    %c0_i32 = arith.constant 0 : i32
    %c0_i32_0 = arith.constant 0 : i32
    %c0_i32_1 = arith.constant 0 : i32
    return %c0_i32, %c0_i32_0 : i32, i32
  }
  func.func @transform_5(%arg0: i32) -> (i32, i32) {
    %c0_i32 = arith.constant 0 : i32
    %c0_i32_0 = arith.constant 0 : i32
    %c0_i32_1 = arith.constant 0 : i32
    return %c0_i32, %c0_i32_0 : i32, i32
  }
  func.func @transform_6(%arg0: i32) -> (i32, i32) {
    %c0_i32 = arith.constant 0 : i32
    %c0_i32_0 = arith.constant 0 : i32
    %c0_i32_1 = arith.constant 0 : i32
    return %c0_i32, %c0_i32_0 : i32, i32
  }
  func.func @transform_7(%arg0: i32) -> (i32, i32) {
    %c0_i32 = arith.constant 0 : i32
    %c0_i32_0 = arith.constant 0 : i32
    return %arg0, %c0_i32 : i32, i32
  }
}

</mosaic_0001>

<bundles_post_ra>
// kernel: task_a_classifier_forward.1
= control target key start
LH: loop header
LB: loop body
LE: loop exit
PB: predicated region body
PF: predicated region fallthrough
CT: control target
= control target key end

     0   :  { %12 = vsyncpa [#allocation3], 0  ;;  %s984_s24 = smov 0   ;;  %s1089_s0 = inlined_call_operand.vmem [shape: bf16[64,32], index: 0, kind: input, shape index: {}]   ;;  %s1090_s1 = inlined_call_operand.vmem [shape: bf16[32,128], index: 1, kind: input, shape index: {}]   ;;  %s1091_s2 = inlined_call_operand.vmem [shape: f32[1,128], index: 2, kind: input, shape index: {}]   ;;  %s1092_s3 = inlined_call_operand.vmem [shape: bf16[128,128], index: 3, kind: input, shape index: {}]   ;;  %s1093_s4 = inlined_call_operand.vmem [shape: f32[1,128], index: 4, kind: input, shape index: {}]   ;;  %s1094_s5 = inlined_call_operand.hbm [shape: bf16[128,128], index: 5, kind: input, shape index: {}]   ;;  %s1095_s6 = inlined_call_operand.vmem [shape: f32[1,128], index: 6, kind: input, shape index: {}]   ;;  %s1096_s7 = inlined_call_operand.vmem [shape: bf16[64,128], index: 7, kind: output, shape index: {}]  }
   0x1 LB: > { %s731_s25 = sadd.s32 4294967295, %s939_s24   ;;  %p733_p0 = scmp.ge.s32.totalorder %s939_s24, 1  ;;  %s939_s24 = sphi %s984_s24, %s18_s24  }
   0x2   : > { %p201_p1 = scmp.lt.s32.totalorder %s939_s24, 3  ;;  %s941_s26 = smov [#allocation2]  }
   0x3   : > { %s225_s27 = sshll.u32 %s941_s26, 4  ;;  %p998_p3 = scmp.eq.s32.totalorder %s731_s25, 0  ;;  %s226_s27 = int_to_ptr.vmem [resolvable:$true] %s225_s27 }
   0x4   : > { %p992_p2 = pnand %p733_p0, %p201_p1  ;;  %s901_s10 = scalar_lea.hbm %s1094_s5, 1024 }
   0x5   : > { %s1101_s29 = scalar_select %p998_p3, 1, 0 }
   0x6   : > { %s1100_s28 = scalar_select %p992_p2, 1, 0 }
   0x7   : > { %p864_p4 = pneg %p992_p2  ;;  %p902_p6 = scmp.ne.s32.totalorder %s1094_s5, %s901_s10 }
   0x8   : > { %p908_p10 = scmp.lt.u32.totalorder %s901_s10, %s1094_s5 }
   0x9   : > { %p1006_p5 = pnand %p998_p3, %p864_p4 }
   0xb   : > { %p903_p7 = pneg %p1006_p5 }
   0xd   : > { %p904_p8 = pnand %p903_p7, %p902_p6 }
   0xf   : > { %p905_p9 = pneg %p904_p8 }
  0x11   : > { %p910_p11 = pnand %p908_p10, %p905_p9 }
  0x13   : > { %913 = shalt.err (!%p910_p11)
}
  0x14   : > { %s914_s15 = scalar_lea.vmem %s226_s27, 1024  ;;  %p922_p1 = scmp.lt.s32.totalorder %s226_s27, %s226_s27 }
  0x15   : > { %p915_p12 = scmp.ne.s32.totalorder %s226_s27, %s914_s15  ;;  %p923_p4 = scmp.lt.s32.totalorder %s914_s15, %s914_s15 }
  0x17   : > { %p917_p13 = pnand %p915_p12, %p903_p7  ;;  %p924_p3 = por %p923_p4, %p922_p1 }
  0x19   : > { %p918_p0 = pneg %p917_p13 }
  0x1b   : > { %p925_p2 = pnand %p924_p3, %p918_p0 }
  0x1d   : > { %928 = shalt.err (!%p925_p2)
}
  0x1e   : > { %s942_s16 = smov 64   ;;  %s943_s17 = smov 4  }
  0x1f   : > { %867 = dma.hbm_to_vmem [thread:$0]  (!%p1006_p5), %s1094_s5, 1024, %s226_s27, [#allocation3], %s942_s16, %s942_s16, %s943_s17  }
  0x20   : > { %p1103_p6 = scmp.ne.s32.totalorder %s1100_s28, 0 }
  0x21   : > { %p1104_p8 = scmp.ne.s32.totalorder (!%p1103_p6), %s1101_s29, 0 }
  0x22   : > { %253 = sbr.rel (%p1103_p6) target bundleno = 715 (0x2cb), region = 48 }
  0x29   : > { %934 = dma.done.wait (%p1104_p8), [#allocation3], 1024  }
  0x2a   : > { %936 = vsyncadd (%p1104_p8), [#allocation3], 4294966272  ;;  %s738_s20 = sshll.u32 %s731_s25, 2  ;;  %v881_v0 = vld [vmem:[%s1090_s1] sm:$0xff]   ;;  %v882_v1 = vld [vmem:[%s1090_s1 + $0x8] sm:$0xff]   ;;  %vm335_vm0 = vcmask 261120  }
  0x2b   : > { %p286_p2 = scmp.lt.s32.totalorder %s738_s20, 7  ;;  %812 = vmatprep.subr.bf16.mxu0 %v881_v0  ;;  %v885_v3 = vld [vmem:[%s1092_s3] sm:$0xff]   ;;  %v886_v4 = vld [vmem:[%s1092_s3 + $0x8] sm:$0xff]   ;;  %v887_v6 = vld [vmem:[%s1092_s3 + $0x10] sm:$0xff]  }
  0x2c   : > { %813 = vmatpush3.bf16.msra.mxu0 %v881_v0  ;;  %820 = vmatprep.subr.bf16.mxu1 %v885_v3  ;;  %v888_v7 = vld [vmem:[%s1092_s3 + $0x18] sm:$0xff]   ;;  %v889_v8 = vld [vmem:[%s1092_s3 + $0x20] sm:$0xff]   ;;  %v890_v9 = vld [vmem:[%s1092_s3 + $0x28] sm:$0xff]  }
  0x2d   : > { %s1106_s20 = smov (!%p286_p2, %s738_s20), 7  ;;  %814 = vmatprep.subr.bf16.mxu0 %v882_v1  ;;  %821 = vmatpush3.bf16.msra.mxu1 %v885_v3  ;;  %v891_v10 = vld [vmem:[%s1092_s3 + $0x30] sm:$0xff]   ;;  %v892_v11 = vld [vmem:[%s1092_s3 + $0x38] sm:$0xff]   ;;  %v893_v12 = vld [vmem:[#allocation2] sm:$0xff]  }
  0x2e   : > { %s739_s21 = sshll.u32 %s1106_s20, 2  ;;  %822 = vmatprep.subr.bf16.mxu1 %v886_v4  ;;  %v894_v13 = vld [vmem:[#allocation2 + $0x8] sm:$0xff]   ;;  %v895_v14 = vld [vmem:[#allocation2 + $0x10] sm:$0xff]   ;;  %v896_v15 = vld [vmem:[#allocation2 + $0x18] sm:$0xff]  }
  0x2f   : > { %s289_s26 = scalar_lea.vmem %s1089_s0, %s739_s21  ;;  %v897_v16 = vld [vmem:[#allocation2 + $0x20] sm:$0xff]   ;;  %v898_v17 = vld [vmem:[#allocation2 + $0x28] sm:$0xff]   ;;  %v899_v33 = vld [vmem:[#allocation2 + $0x30] sm:$0xff]   ;;  %s295_s11 = scalar_lea.vmem %s1096_s7, %s739_s21 }
  0x30   : > { %v883_v2 = vld [vmem:[%s289_s26] sm:$0xff]   ;;  %v884_v5 = vld [vmem:[%s289_s26 + $0x8] sm:$0xff]   ;;  %815 = vmatpush3.bf16.msra.mxu0 %v882_v1  ;;  %v900_v34 = vld [vmem:[#allocation2 + $0x38] sm:$0xff]  }
  0x31   : > { %816 = vmatprep.mubr.msk.bf16.mxu0 %vm335_vm0, %v883_v2  ;;  %823 = vmatpush3.bf16.msra.mxu1 %v886_v4  ;;  %v742_v18 = vld [vmem:[%s1091_s2] ss:$0 sm:$0xff] }
  0x32   : > { %824 = vmatprep.subr.bf16.mxu1 %v887_v6  ;;  %840 = vmatprep.subr.bf16.mxu0 %v893_v12  ;;  %v749_v35 = vld [vmem:[%s1093_s4] ss:$0 sm:$0xff] }
  0x33   : > { %817 = vmatmul.mubr.msk.bf16.vlgmr.msra.gmra.mrb[0].mxu0 %vm335_vm0, %v884_v5  ;;  %v758_v51 = vld [vmem:[%s1095_s6] ss:$0 sm:$0xff] }
  0x34   : > { %841 = vmatpush3.bf16.msra.mxu0 %v893_v12 }
  0x35   : > { %825 = vmatpush3.bf16.msra.mxu1 %v887_v6  ;;  %842 = vmatprep.subr.bf16.mxu0 %v894_v13 }
  0x36   : > { %826 = vmatprep.subr.bf16.mxu1 %v888_v7 }
  0x38   : > { %843 = vmatpush3.bf16.msra.mxu0 %v894_v13 }
  0x39   : > { %827 = vmatpush3.bf16.msra.mxu1 %v888_v7  ;;  %844 = vmatprep.subr.bf16.mxu0 %v895_v14 }
  0x3a   : > { %828 = vmatprep.subr.bf16.mxu1 %v889_v8 }
  0x3c   : > { %845 = vmatpush3.bf16.msra.mxu0 %v895_v14 }
  0x3d   : > { %829 = vmatpush3.bf16.msra.mxu1 %v889_v8  ;;  %846 = vmatprep.subr.bf16.mxu0 %v896_v15 }
  0x3e   : > { %830 = vmatprep.subr.bf16.mxu1 %v890_v9 }
  0x40   : > { %847 = vmatpush3.bf16.msra.mxu0 %v896_v15 }
  0x41   : > { %831 = vmatpush3.bf16.msra.mxu1 %v890_v9  ;;  %848 = vmatprep.subr.bf16.mxu0 %v897_v16 }
  0x42   : > { %832 = vmatprep.subr.bf16.mxu1 %v891_v10 }
  0x44   : > { %849 = vmatpush3.bf16.msra.mxu0 %v897_v16 }
  0x45   : > { %833 = vmatpush3.bf16.msra.mxu1 %v891_v10  ;;  %850 = vmatprep.subr.bf16.mxu0 %v898_v17 }
  0x46   : > { %834 = vmatprep.subr.bf16.mxu1 %v892_v11 }
  0x48   : > { %851 = vmatpush3.bf16.msra.mxu0 %v898_v17 }
  0x49   : > { %835 = vmatpush3.bf16.msra.mxu1 %v892_v11  ;;  %852 = vmatprep.subr.bf16.mxu0 %v899_v33 }
  0x4c   : > { %853 = vmatpush3.bf16.msra.mxu0 %v899_v33 }
  0x4d   : > { %854 = vmatprep.subr.bf16.mxu0 %v900_v34 }
  0x50   : > { %855 = vmatpush3.bf16.msra.mxu0 %v900_v34 }
 0x106   : > { %v818_v19 = vpop.f32.mrb[0].mxu0 }
 0x107   : > { %v385_v20 = vadd.f32 %v818_v19, %v742_v18  ;;  %v376_v21 = vpop.f32.mrb[1].mxu0 }
 0x108   : > { %v377_v22 = vadd.f32 %v742_v18, %v376_v21  ;;  %v819_v23 = vpop.f32.mrb[2].mxu0 }
 0x109   : > { %v388_v24 = vadd.f32 %v819_v23, %v742_v18  ;;  %v379_v25 = vpop.f32.mrb[3].mxu0  ;;  %v393_v27 = vmax.f32 %v385_v20, 0.0 }
 0x10a   : > { %v380_v26 = vadd.f32 %v742_v18, %v379_v25  ;;  %v391_v29 = vmax.f32 %v377_v22, 0.0 }
 0x10b   : > { %v394_v28 = vmax.f32 %v388_v24, 0.0 }
 0x10c   : > { %v392_v30 = vmax.f32 %v380_v26, 0.0 }
 0x10d   : > { %v396_v31 = vpack.c.bf16 %v394_v28, %v393_v27 }
 0x10e   : > { %v395_v32 = vpack.c.bf16 %v392_v30, %v391_v29 }
 0x110   : > { %836 = vmatprep.mubr.bf16.mxu1 %v395_v32 }
 0x111   : > { %837 = vmatmul.mubr.bf16.vlgmr.msra.gmra.mrb[0].mxu1 %v396_v31 }
 0x1e4   : > { %v838_v36 = vpop.f32.mrb[0].mxu1 }
 0x1e5   : > { %v511_v37 = vadd.f32 %v838_v36, %v749_v35  ;;  %v502_v38 = vpop.f32.mrb[1].mxu1 }
 0x1e6   : > { %v503_v39 = vadd.f32 %v749_v35, %v502_v38  ;;  %v839_v40 = vpop.f32.mrb[2].mxu1 }
 0x1e7   : > { %v514_v41 = vadd.f32 %v839_v40, %v749_v35  ;;  %v505_v42 = vpop.f32.mrb[3].mxu1  ;;  %v519_v44 = vmax.f32 %v511_v37, 0.0 }
 0x1e8   : > { %v506_v43 = vadd.f32 %v749_v35, %v505_v42  ;;  %v517_v46 = vmax.f32 %v503_v39, 0.0 }
 0x1e9   : > { %v520_v45 = vmax.f32 %v514_v41, 0.0 }
 0x1ea   : > { %v518_v47 = vmax.f32 %v506_v43, 0.0 }
 0x1eb   : > { %v522_v48 = vpack.c.bf16 %v520_v45, %v519_v44 }
 0x1ec   : > { %v521_v49 = vpack.c.bf16 %v518_v47, %v517_v46 }
 0x1ee   : > { %856 = vmatprep.mubr.bf16.mxu0 %v521_v49 }
 0x1ef   : > { %857 = vmatmul.mubr.bf16.vlgmr.msra.gmra.mrb[4].mxu0 %v522_v48 }
 0x2c2   : > { %v858_v50 = vpop.f32.mrb[4].mxu0 }
 0x2c3   : > { %v628_v52 = vpop.f32.mrb[5].mxu0  ;;  %v637_v54 = vadd.f32 %v858_v50, %v758_v51 }
 0x2c4   : > { %v859_v53 = vpop.f32.mrb[6].mxu0  ;;  %v629_v57 = vadd.f32 %v758_v51, %v628_v52 }
 0x2c5   : > { %v640_v55 = vadd.f32 %v859_v53, %v758_v51  ;;  %v631_v56 = vpop.f32.mrb[7].mxu0 }
 0x2c6   : > { %v632_v58 = vadd.f32 %v758_v51, %v631_v56 }
 0x2c7   : > { %v785_v59 = vpack.c.bf16 %v640_v55, %v637_v54 }
 0x2c8   : > { %v780_v60 = vpack.c.bf16 %v632_v58, %v629_v57 }
 0x2c9   : > { %787 = vst [vmem:[%s295_s11 + $0x8] sm:$0xff] %v785_v59  }
 0x2ca   : > { %781 = vst [vmem:[%s295_s11] sm:$0xff] %v780_v60  }
 0x2cb PF: > { %s18_s24 = sadd.s32 1, %s939_s24  }
 0x2cc   : > { %p15_p3 = scmp.ge.s32.totalorder %s18_s24, 4  }
 0x2ce   :  { %17 = sbr.rel (!%p15_p3) target bundleno = 1 (0x1), region = 83 }
 0x2d5   :  { %685 = vsyncpa [#allocation3], 1 }
 0x2d6   :  { %687 = vsyncpa [#allocation3 + $0x1], 1 }

</bundles_post_ra>
